<compile_context>
chip_gen: v5e
topology: v5e:2x2
jax: 0.10.0
libtpu: 0.0.40
codegen_flags: <defaults>
</compile_context>

<pallas_src>
import functools

import jax
import jax.numpy as jnp
import numpy as np
from jax.experimental import pallas as pl
from jax.experimental.pallas import tpu as pltpu

BINS = 100
MOMENTUM = 0.6
NUM_ATTRS = 40  # matches torch.zeros(40, bins) in __init__

LANES = 128
SUBLANES = 8


def _bce_with_logits(x, z):
    """Numerically-stable BCEWithLogits: max(x,0) - x*z + log1p(exp(-|x|))."""
    return jnp.maximum(x, 0.0) - x * z + jnp.log1p(jnp.exp(-jnp.abs(x)))


def _sublane_multiple(dtype):
    """Sublane tiling multiple for a dtype: 8 (f32), 16 (bf16), 32 (int8)."""
    return SUBLANES * max(1, 4 // np.dtype(dtype).itemsize)


def _ghmc_bce_kernel(pred_ref, target_ref, out_ref, *, steps, tile_rows, rows,
                     total_tiles, may_overhang, needs_tile_guard):
    """Stable BCE-with-logits over one lane-dense (tile_rows, 128) tile.

    Accumulates into a resident (8, 128) f32 output block (one per chunk).
    Only the single tile that overhangs `rows` executes the masked path; the
    hot path is a pure unmasked vreg fold (VALU adds, no cross-lane reduce).
    """
    c = pl.program_id(0)   # chunk axis (CORE_PARALLEL on v7x when chunked)
    i = pl.program_id(1)   # reduction axis within a chunk ("arbitrary")
    tile_idx = c * steps + i

    @pl.when(i == 0)
    def _():
        out_ref[...] = jnp.zeros_like(out_ref)

    def accumulate():
        x = pred_ref[...].astype(jnp.float32)
        z = target_ref[...].astype(jnp.float32)

        # TODO(synk): the GHM bin re-weighting (|sigmoid(x) - z| histogram) is
        # dead code in the reference module (num_in_bin never populated), so
        # it is intentionally not computed here.
        per_elem = _bce_with_logits(x, z)

        def fold(v):
            # VALU-only partial reduction: fold the tile into one (8,128) slab.
            out_ref[...] += v.reshape(-1, SUBLANES, LANES).sum(axis=0)

        if may_overhang:
            base_row = tile_idx * tile_rows
            is_partial = base_row + tile_rows > rows

            @pl.when(is_partial)
            def _():
                # Row-level (not flat-element) comparison: no int32 overflow,
                # and the overhanging block contents (undefined, not zero) are
                # excluded from the sum.
                row_ids = jax.lax.broadcasted_iota(
                    jnp.int32, (tile_rows, LANES), 0)
                valid = (base_row + row_ids) < rows
                fold(jnp.where(valid, per_elem, 0.0))

            @pl.when(jnp.logical_not(is_partial))
            def _():
                fold(per_elem)
        else:
            fold(per_elem)

    if needs_tile_guard:
        # Only reachable when num_chunks > 1 and the chunked grid over-covers
        # the tile range: trailing (c, i) slots are skipped entirely.
        @pl.when(tile_idx < total_tiles)
        def _():
            accumulate()
    else:
        accumulate()


def ghmc_loss(pred, target, *, tile_rows=4096, num_chunks=1,
              min_pallas_elems=1 << 16):
    """Forward of GHMCLoss: scalar mean BCE-with-logits loss."""
    assert pred.shape == target.shape
    total = int(pred.size)

    flat_p = pred.reshape(-1)
    flat_t = target.reshape(-1)

    rows = total // LANES            # full lane-dense rows
    tail = total - rows * LANES      # < 128 ragged tail elements

    # Sublane multiple that keeps tiling valid even if target arrives as a
    # narrower (bf16 / int8) dtype — the kernel casts to f32 internally.
    smult = max(_sublane_multiple(pred.dtype), _sublane_multiple(target.dtype))

    if total < min_pallas_elems or rows < smult:
        # Small-input fallback: fixed pallas_call launch / reshape overhead
        # would dominate, so compute directly in XLA.
        return jnp.mean(_bce_with_logits(flat_p.astype(jnp.float32),
                                         flat_t.astype(jnp.float32)))

    # Tile: requested size rounded to the sublane multiple and clamped so a
    # block never exceeds the array (no fully out-of-bounds blocks).
    tile_rows = max(smult, (min(tile_rows, rows) // smult) * smult)
    total_tiles = pl.cdiv(rows, tile_rows)
    num_chunks = max(1, min(num_chunks, total_tiles))
    steps = pl.cdiv(total_tiles, num_chunks)

    may_overhang = total_tiles * tile_rows > rows        # at most one tile
    needs_tile_guard = num_chunks * steps > total_tiles  # only when chunked

    aligned = rows * LANES
    if tail:
        # Kernel consumes the lane-aligned prefix; the < 128-element ragged
        # tail is reduced in plain XLA (no full-array jnp.pad copy).
        main_p = jax.lax.slice_in_dim(flat_p, 0, aligned).reshape(rows, LANES)
        main_t = jax.lax.slice_in_dim(flat_t, 0, aligned).reshape(rows, LANES)
        tail_sum = jnp.sum(_bce_with_logits(
            jax.lax.slice_in_dim(flat_p, aligned, total).astype(jnp.float32),
            jax.lax.slice_in_dim(flat_t, aligned, total).astype(jnp.float32)))
    else:
        main_p = flat_p.reshape(rows, LANES)   # zero-copy bitcast
        main_t = flat_t.reshape(rows, LANES)
        tail_sum = jnp.float32(0.0)

    if needs_tile_guard:
        def in_map(c, i):
            return (jnp.minimum(c * steps + i, total_tiles - 1), 0)
    else:
        def in_map(c, i):
            return (c * steps + i, 0)

    kernel = functools.partial(
        _ghmc_bce_kernel,
        steps=steps, tile_rows=tile_rows, rows=rows, total_tiles=total_tiles,
        may_overhang=may_overhang, needs_tile_guard=needs_tile_guard)

    # Single-TC chips (v5e/v6e): num_chunks=1, pure sequential reduction.
    # v7x: pass num_chunks=2 so CORE_PARALLEL shards the chunk axis across the
    # two TensorCores, each with its own resident accumulator block.
    chunk_sem = pltpu.CORE_PARALLEL if num_chunks > 1 else "arbitrary"

    partials = pl.pallas_call(
        kernel,
        out_shape=jax.ShapeDtypeStruct((num_chunks * SUBLANES, LANES),
                                       jnp.float32),
        grid=(num_chunks, steps),
        in_specs=[pl.BlockSpec((tile_rows, LANES), in_map),
                  pl.BlockSpec((tile_rows, LANES), in_map)],
        out_specs=pl.BlockSpec((SUBLANES, LANES), lambda c, i: (c, 0)),
        compiler_params=pltpu.CompilerParams(
            dimension_semantics=(chunk_sem, "arbitrary"),
            vmem_limit_bytes=32 * 1024 * 1024),
    )(main_p, main_t)

    # Tiny final reduce (num_chunks*8*128 partials) + mean, in plain XLA.
    return (jnp.sum(partials) + tail_sum) / total


class GHMCLossState:
    """Mirrors the (deterministically initialized) module state."""

    def __init__(self):
        self.bins = BINS
        self.momentum = MOMENTUM
        self.edges = [float(x) / BINS for x in range(BINS + 1)]
        self.edges[-1] += 1e-06
        self.acc_sum = None
        self.class_loss_weight = None
        self.weight_num = jnp.zeros((NUM_ATTRS, BINS), jnp.float32)

    def forward(self, pred, target):
        # weight_num += num_in_bin, but num_in_bin is identically zero in the
        # reference implementation -> no-op state update.
        return ghmc_loss(pred, target)

    def set_weight(self, weight):
        self.class_loss_weight = weight

    def get_weight_num(self):
        a = self.weight_num
        self.weight_num = jnp.zeros((NUM_ATTRS, BINS), jnp.float32)
        return a


if __name__ == "__main__":
    key = jax.random.PRNGKey(0)
    k = jax.random.split(key, 6)

    def ref_bce(pred, target):
        p = pred.astype(jnp.float32)
        t = target.astype(jnp.float32)
        return jnp.mean(_bce_with_logits(p, t))

    loss_mod = GHMCLossState()

    # Case 1: lane-aligned total (512*40 = 20480 = 160*128).  Small tile_rows
    # so the grid has several reduction steps and the masked overhang tile
    # (160 % 64 != 0) is exercised.
    batch, class_num = 512, NUM_ATTRS
    pred = jax.random.normal(k[0], (batch, class_num), dtype=jnp.float32)
    target = (jax.random.uniform(k[1], (batch, class_num)) > 0.5).astype(
        jnp.float32)
    loss = jax.block_until_ready(
        ghmc_loss(pred, target, tile_rows=64, min_pallas_elems=0))
    ref = ref_bce(pred, target)
    assert jnp.allclose(loss, ref, rtol=1e-5, atol=1e-5), (loss, ref)

    # Case 2: ragged total (313*40 = 12520, not a multiple of 128) -> masked
    # overhang tile in-kernel + <128-element tail reduced in the wrapper.
    batch2 = 313
    pred2 = jax.random.normal(k[2], (batch2, class_num), dtype=jnp.float32)
    target2 = (jax.random.uniform(k[3], (batch2, class_num)) > 0.5).astype(
        jnp.float32)
    loss2 = jax.block_until_ready(
        ghmc_loss(pred2, target2, tile_rows=64, min_pallas_elems=0))
    ref2 = ref_bce(pred2, target2)
    assert jnp.allclose(loss2, ref2, rtol=1e-5, atol=1e-5), (loss2, ref2)

    # Case 3: tiny input through the module API (small-input jnp fallback).
    batch3 = 13
    pred3 = jax.random.normal(k[4], (batch3, class_num), dtype=jnp.float32)
    target3 = (jax.random.uniform(k[5], (batch3, class_num)) > 0.5).astype(
        jnp.float32)
    loss3 = jax.block_until_ready(loss_mod.forward(pred3, target3))
    ref3 = ref_bce(pred3, target3)
    assert jnp.allclose(loss3, ref3, rtol=1e-5, atol=1e-6), (loss3, ref3)

    print("KERNEL_OK")
</pallas_src>

<mosaic_0001>
module attributes {stable_mosaic.version = 11 : i64} {
  func.func @_ghmc_bce_kernel(%arg0: i32, %arg1: i32, %arg2: memref<64x128xf32, #tpu.memory_space<vmem>>, %arg3: memref<64x128xf32, #tpu.memory_space<vmem>>, %arg4: memref<8x128xf32, #tpu.memory_space<vmem>>) attributes {dimension_semantics = [#tpu.dimension_semantics<arbitrary>, #tpu.dimension_semantics<arbitrary>], iteration_bounds = array<i64: 1, 3>, scalar_prefetch = 0 : i64, scratch_operands = 0 : i64, tpu.core_type = #tpu.core_type<tc>, window_params = [{transform_indices = @transform_0, window_bounds = array<i64: 64, 128>}, {transform_indices = @transform_1, window_bounds = array<i64: 64, 128>}, {transform_indices = @transform_2, window_bounds = array<i64: 8, 128>}]} {
    %c3_i32 = arith.constant 3 : i32
    %0 = arith.muli %arg0, %c3_i32 : i32
    %1 = arith.addi %0, %arg1 : i32
    %c0_i32 = arith.constant 0 : i32
    %2 = arith.cmpi eq, %arg1, %c0_i32 : i32
    %3 = arith.extui %2 : i1 to i32
    %c0_i32_0 = arith.constant 0 : i32
    %4 = arith.cmpi ne, %3, %c0_i32_0 : i32
    scf.if %4 {
      %cst_8 = arith.constant 0.000000e+00 : f32
      %25 = vector.broadcast %cst_8 : f32 to vector<8x128xf32>
      %c0_9 = arith.constant 0 : index
      %c0_10 = arith.constant 0 : index
      %26 = vector.load %arg4[%c0_9, %c0_10] : memref<8x128xf32, #tpu.memory_space<vmem>>, vector<8x128xf32>
      tpu.vector_store %arg4[%c0_9, %c0_10], %25 {strides = array<i32>} : memref<8x128xf32, #tpu.memory_space<vmem>>, vector<8x128xf32>,
    } else {
    }
    %c0 = arith.constant 0 : index
    %c0_1 = arith.constant 0 : index
    %5 = vector.load %arg2[%c0, %c0_1] : memref<64x128xf32, #tpu.memory_space<vmem>>, vector<64x128xf32>
    %c0_2 = arith.constant 0 : index
    %c0_3 = arith.constant 0 : index
    %6 = vector.load %arg3[%c0_2, %c0_3] : memref<64x128xf32, #tpu.memory_space<vmem>>, vector<64x128xf32>
    %cst = arith.constant 0.000000e+00 : f32
    %7 = vector.broadcast %cst : f32 to vector<64x128xf32>
    %8 = arith.maximumf %5, %7 : vector<64x128xf32>
    %9 = arith.mulf %5, %6 : vector<64x128xf32>
    %10 = arith.subf %8, %9 : vector<64x128xf32>
    %11 = math.absf %5 : vector<64x128xf32>
    %cst_4 = arith.constant 0.000000e+00 : f32
    %12 = vector.broadcast %cst_4 : f32 to vector<64x128xf32>
    %13 = arith.subf %12, %11 : vector<64x128xf32>
    %14 = math.exp %13 : vector<64x128xf32>
    %15 = math.log1p %14 : vector<64x128xf32>
    %16 = arith.addf %10, %15 : vector<64x128xf32>
    %c64_i32 = arith.constant 64 : i32
    %17 = arith.muli %1, %c64_i32 : i32
    %c64_i32_5 = arith.constant 64 : i32
    %18 = arith.addi %17, %c64_i32_5 : i32
    %c160_i32 = arith.constant 160 : i32
    %19 = arith.cmpi sgt, %18, %c160_i32 : i32
    %20 = arith.extui %19 : i1 to i32
    %c0_i32_6 = arith.constant 0 : i32
    %21 = arith.cmpi ne, %20, %c0_i32_6 : i32
    scf.if %21 {
      %25 = tpu.iota {dimensions = array<i32: 0>} : vector<64x128xi32>
      %26 = vector.broadcast %17 : i32 to vector<64x128xi32>
      %27 = arith.addi %26, %25 : vector<64x128xi32>
      %c160_i32_8 = arith.constant 160 : i32
      %28 = vector.broadcast %c160_i32_8 : i32 to vector<64x128xi32>
      %29 = arith.cmpi slt, %27, %28 : vector<64x128xi32>
      %cst_9 = arith.constant 0.000000e+00 : f32
      %30 = vector.broadcast %cst_9 : f32 to vector<64x128xf32>
      %31 = arith.select %29, %16, %30 : vector<64x128xi1>, vector<64x128xf32>
      %c0_10 = arith.constant 0 : index
      %c0_11 = arith.constant 0 : index
      %32 = vector.load %arg4[%c0_10, %c0_11] : memref<8x128xf32, #tpu.memory_space<vmem>>, vector<8x128xf32>
      %33 = vector.shape_cast %31 : vector<64x128xf32> to vector<8x8x128xf32>
      %cst_12 = arith.constant dense<0.000000e+00> : vector<8x128xf32>
      %34 = vector.multi_reduction <add>, %33, %cst_12 [0] : vector<8x8x128xf32> to vector<8x128xf32>
      %35 = arith.addf %32, %34 : vector<8x128xf32>
      %c0_13 = arith.constant 0 : index
      %c0_14 = arith.constant 0 : index
      %36 = vector.load %arg4[%c0_13, %c0_14] : memref<8x128xf32, #tpu.memory_space<vmem>>, vector<8x128xf32>
      tpu.vector_store %arg4[%c0_13, %c0_14], %35 {strides = array<i32>} : memref<8x128xf32, #tpu.memory_space<vmem>>, vector<8x128xf32>,
    } else {
    }
    %true = arith.constant true
    %22 = arith.xori %19, %true : i1
    %23 = arith.extui %22 : i1 to i32
    %c0_i32_7 = arith.constant 0 : i32
    %24 = arith.cmpi ne, %23, %c0_i32_7 : i32
    scf.if %24 {
      %c0_8 = arith.constant 0 : index
      %c0_9 = arith.constant 0 : index
      %25 = vector.load %arg4[%c0_8, %c0_9] : memref<8x128xf32, #tpu.memory_space<vmem>>, vector<8x128xf32>
      %26 = vector.shape_cast %16 : vector<64x128xf32> to vector<8x8x128xf32>
      %cst_10 = arith.constant dense<0.000000e+00> : vector<8x128xf32>
      %27 = vector.multi_reduction <add>, %26, %cst_10 [0] : vector<8x8x128xf32> to vector<8x128xf32>
      %28 = arith.addf %25, %27 : vector<8x128xf32>
      %c0_11 = arith.constant 0 : index
      %c0_12 = arith.constant 0 : index
      %29 = vector.load %arg4[%c0_11, %c0_12] : memref<8x128xf32, #tpu.memory_space<vmem>>, vector<8x128xf32>
      tpu.vector_store %arg4[%c0_11, %c0_12], %28 {strides = array<i32>} : memref<8x128xf32, #tpu.memory_space<vmem>>, vector<8x128xf32>,
    } else {
    }
    return
  }
  func.func @transform_0(%arg0: i32, %arg1: i32) -> (i32, i32) {
    %c3_i32 = arith.constant 3 : i32
    %0 = arith.muli %arg0, %c3_i32 : i32
    %1 = arith.addi %0, %arg1 : i32
    %c0_i32 = arith.constant 0 : i32
    %c0_i32_0 = arith.constant 0 : i32
    return %1, %c0_i32 : i32, i32
  }
  func.func @transform_1(%arg0: i32, %arg1: i32) -> (i32, i32) {
    %c3_i32 = arith.constant 3 : i32
    %0 = arith.muli %arg0, %c3_i32 : i32
    %1 = arith.addi %0, %arg1 : i32
    %c0_i32 = arith.constant 0 : i32
    %c0_i32_0 = arith.constant 0 : i32
    return %1, %c0_i32 : i32, i32
  }
  func.func @transform_2(%arg0: i32, %arg1: i32) -> (i32, i32) {
    %c0_i32 = arith.constant 0 : i32
    %c0_i32_0 = arith.constant 0 : i32
    return %arg0, %c0_i32 : i32, i32
  }
}

</mosaic_0001>

<bundles_post_ra>
// kernel: tpu_custom_call.1
= control target key start
LH: loop header
LB: loop body
LE: loop exit
PB: predicated region body
PF: predicated region fallthrough
CT: control target
= control target key end

     0   :  { %7 = vsyncpa [#allocation3], 0  ;;  %s1200_s0 = inlined_call_operand.hbm [shape: f32[160,128], index: 0, kind: input, shape index: {}]   ;;  %s1201_s1 = inlined_call_operand.hbm [shape: f32[160,128], index: 1, kind: input, shape index: {}]   ;;  %s1202_s2 = inlined_call_operand.hbm [shape: f32[8,128], index: 2, kind: output, shape index: {}]  }
   0x1   :  { %9 = vsyncpa [#allocation3 + $0x1], 0 }
   0x2   :  { %10 = vsyncpa [#allocation6], 0 }
   0x3   :  { %12 = vsyncpa [#allocation6 + $0x1], 0 }
   0x4   :  { %13 = vsyncpa [#allocation4], 0  ;;  %s886_s9 = smov 0   ;;  %s888_s10 = smov 0  }
   0x5   :  { %s890_s11 = smov 0   ;;  %s892_s12 = smov 0  }
   0x6   :  { %s894_s13 = smov 0   ;;  %s896_s14 = smov 0  }
   0x7 LB: > { %s573_s15 = sadd.s32 4294967295, %s861_s14   ;;  %s28_s16 = sadd.s32 1, %s857_s13  ;;  %s861_s14 = sphi %s896_s14, %s19_s14   ;;  %s857_s13 = sphi %s894_s13, %s1223_s13   ;;  %s853_s12 = sphi %s892_s12, %s1222_s12   ;;  %s849_s11 = sphi %s890_s11, %s1221_s11   ;;  %s845_s10 = sphi %s888_s10, %s1220_s10   ;;  %s841_s9 = sphi %s886_s9, %s1219_s9  }
   0x8   : > { %p29_p0 = scmp.ge.s32.totalorder %s28_s16, 3  ;;  %s42_s17 = sadd.s32 1, %s849_s11 }
   0x9   : > { %p49_p1 = scmp.ne.s32.totalorder %s849_s11, %s845_s10  ;;  %p50_p2 = scmp.eq.s32.totalorder %s861_s14, 0 }
   0xa   : > { %s1225_s16 = smov (%p29_p0, %s28_s16), 0  ;;  %p55_p4 = scmp.ne.s32.totalorder %s845_s10, %s841_s9 }
   0xb   : > { %p922_p3 = por %p50_p2, %p49_p1  ;;  %s39_s19 = ssub.s32 %s857_s13, %s1225_s16 }
   0xc   : > { %p56_p5 = scmp.eq.s32.totalorder %s573_s15, 0  ;;  %p40_p6 = scmp.eq.s32.totalorder %s39_s19, 0 }
   0xd   : > { %p575_p8 = scmp.ge.s32.totalorder %s861_s14, 3 }
   0xe   : > { %p931_p7 = por %p56_p5, %p55_p4 }
   0xf   : > { %s936_s21 = scalar_select %p40_p6, %s849_s11, %s42_s17  }
  0x10   : > { %131 = sbr.rel (%p575_p8) target bundleno = 93 (0x5d), region = 16 }
  0x15   : > { %134 = sbr.rel (!%p922_p3) target bundleno = 57 (0x39), region = 20  ;;  %s135_s22 = sand.u32 (%p922_p3), 1, %s849_s11  }
  0x16   : > { %s577_s23 = sshll.u32 (%p922_p3), %s857_s13, 3  ;;  %s576_s24 = sshll.u32 (%p922_p3), %s135_s22, 6 }
  0x17   : > { %s143_s25 = ssub.s32 (%p922_p3), 20, %s577_s23  ;;  %s946_s29 = scalar_lea.sflag (%p922_p3), [#allocation3], %s135_s22 }
  0x18   : > { %p144_p9 = scmp.lt.s32.totalorder (%p922_p3), %s143_s25, 8  ;;  %s139_s30 = scalar_lea.vmem (%p922_p3), [#allocation2], %s576_s24 }
  0x1a   : > { %s1227_s25 = smov (!%p144_p9, %s143_s25), 8 }
  0x1b   : > { %s578_s26 = sshll.u32 %s1227_s25, 3 }
  0x1c   : > { %s147_s27 = ssub.s32 64, %s578_s26 }
  0x1d   : > { %s148_s28 = sshll.u32 %s147_s27, 4 }
  0x1e   : > { %149 = vsyncadd %s946_s29, %s148_s28  ;;  %p949_p10 = scmp.ne.s32.totalorder %s578_s26, 0  ;;  %s601_s4 = sshll.u32 %s857_s13, 6 }
  0x1f   : > { %s152_s7 = scalar_lea.hbm %s1200_s0, %s601_s4  ;;  %s957_s8 = sshll.u32 %s139_s30, 4  ;;  %s157_s8 = int_to_ptr.vmem [resolvable:$true] %s957_s8 }
  0x20   : > { %s154_s9 = sshll.u32 %s152_s7, 4  ;;  %s582_s17 = sshll.u32 %s1227_s25, 7  ;;  %s960_s9 = int_to_ptr.hbm [resolvable:$true] %s154_s9 }
  0x21   : > { %s697_s19 = sshra.s32 %s960_s9, 4  ;;  %s699_s22 = sshrl.u32 %s582_s17, 4  ;;  %s698_s19 = int_to_ptr.hbm [resolvable:$true] %s697_s19 }
  0x22   : > { %s704_s23 = scalar_lea.hbm %s698_s19, %s699_s22  ;;  %s708_s27 = scalar_lea.hbm %s1200_s0, 160 }
  0x23   : > { %p705_p11 = scmp.ne.s32.totalorder %s698_s19, %s704_s23  ;;  %p710_p0 = scmp.lt.s32.totalorder %s708_s27, %s704_s23 }
  0x25   : > { %p706_p12 = pnand %p705_p11, %p949_p10 }
  0x27   : > { %p707_p13 = pneg %p706_p12 }
  0x29   : > { %p712_p1 = pnand %p710_p0, %p707_p13 }
  0x2b   : > { %715 = shalt.err (!%p712_p1)
}
  0x2c   : > { %s716_s28 = sshra.s32 %s157_s8, 4  ;;  %s863_s4 = smov [#allocation2]   ;;  %s717_s28 = int_to_ptr.vmem [resolvable:$true] %s716_s28 }
  0x2d   : > { %s723_s30 = scalar_lea.vmem %s717_s28, %s699_s22  ;;  %s727_s5 = scalar_lea.vmem %s863_s4, 128 }
  0x2e   : > { %p724_p2 = scmp.ne.s32.totalorder %s717_s28, %s723_s30  ;;  %p729_p6 = scmp.lt.s32.totalorder %s727_s5, %s723_s30 }
  0x30   : > { %p725_p4 = pnand %p724_p2, %p949_p10 }
  0x32   : > { %p726_p5 = pneg %p725_p4 }
  0x34   : > { %p731_p8 = pnand %p729_p6, %p726_p5 }
  0x36   : > { %734 = shalt.err (!%p731_p8)
}
  0x37   : > { %s864_s6 = smov 128   ;;  %s865_s7 = smov 8  }
  0x38   : > { %162 = dma.hbm_to_vmem [thread:$0]  (%p949_p10), %s960_s9, %s582_s17, %s157_s8, %s946_s29, %s864_s6, %s864_s6, %s865_s7  }
  0x39 PF: > { %165 = sbr.rel (!%p922_p3) target bundleno = 93 (0x5d), region = 24  ;;  %s166_s19 = sand.u32 (%p922_p3), 1, %s849_s11  }
  0x3a   : > { %s584_s22 = sshll.u32 (%p922_p3), %s857_s13, 3  ;;  %s583_s23 = sshll.u32 (%p922_p3), %s166_s19, 6 }
  0x3b   : > { %s174_s24 = ssub.s32 (%p922_p3), 20, %s584_s22  ;;  %s990_s28 = scalar_lea.sflag (%p922_p3), [#allocation6], %s166_s19 }
  0x3c   : > { %p175_p9 = scmp.lt.s32.totalorder (%p922_p3), %s174_s24, 8  ;;  %s170_s25 = scalar_lea.vmem (%p922_p3), [#allocation5], %s583_s23 }
  0x3e   : > { %s1229_s24 = smov (!%p175_p9, %s174_s24), 8 }
  0x3f   : > { %s585_s26 = sshll.u32 %s1229_s24, 3 }
  0x40   : > { %s178_s27 = ssub.s32 64, %s585_s26 }
  0x41   : > { %s179_s3 = sshll.u32 %s178_s27, 4 }
  0x42   : > { %180 = vsyncadd %s990_s28, %s179_s3  ;;  %p993_p3 = scmp.ne.s32.totalorder %s585_s26, 0  ;;  %s602_s29 = sshll.u32 %s857_s13, 6 }
  0x43   : > { %s183_s17 = scalar_lea.hbm %s1201_s1, %s602_s29  ;;  %s1001_s30 = sshll.u32 %s170_s25, 4  ;;  %s188_s30 = int_to_ptr.vmem [resolvable:$true] %s1001_s30 }
  0x44   : > { %s185_s4 = sshll.u32 %s183_s17, 4  ;;  %s589_s5 = sshll.u32 %s1229_s24, 7  ;;  %s1004_s4 = int_to_ptr.hbm [resolvable:$true] %s185_s4 }
  0x45   : > { %s736_s6 = sshra.s32 %s1004_s4, 4  ;;  %s738_s7 = sshrl.u32 %s589_s5, 4  ;;  %s737_s6 = int_to_ptr.hbm [resolvable:$true] %s736_s6 }
  0x46   : > { %s743_s19 = scalar_lea.hbm %s737_s6, %s738_s7  ;;  %s747_s26 = scalar_lea.hbm %s1201_s1, 160 }
  0x47   : > { %p744_p10 = scmp.ne.s32.totalorder %s737_s6, %s743_s19  ;;  %p749_p13 = scmp.lt.s32.totalorder %s747_s26, %s743_s19 }
  0x49   : > { %p745_p11 = pnand %p744_p10, %p993_p3 }
  0x4b   : > { %p746_p12 = pneg %p745_p11 }
  0x4d   : > { %p751_p0 = pnand %p749_p13, %p746_p12 }
  0x4f   : > { %754 = shalt.err (!%p751_p0)
}
  0x50   : > { %s755_s27 = sshra.s32 %s188_s30, 4  ;;  %s866_s25 = smov [#allocation5]   ;;  %s756_s27 = int_to_ptr.vmem [resolvable:$true] %s755_s27 }
  0x51   : > { %s762_s3 = scalar_lea.vmem %s756_s27, %s738_s7  ;;  %s766_s29 = scalar_lea.vmem %s866_s25, 128 }
  0x52   : > { %p763_p1 = scmp.ne.s32.totalorder %s756_s27, %s762_s3  ;;  %p768_p5 = scmp.lt.s32.totalorder %s766_s29, %s762_s3 }
  0x54   : > { %p764_p2 = pnand %p763_p1, %p993_p3 }
  0x56   : > { %p765_p4 = pneg %p764_p2 }
  0x58   : > { %p770_p6 = pnand %p768_p5, %p765_p4 }
  0x5a   : > { %773 = shalt.err (!%p770_p6)
}
  0x5b   : > { %s867_s8 = smov 128   ;;  %s868_s9 = smov 8  }
  0x5c   : > { %193 = dma.hbm_to_vmem [thread:$0]  (%p993_p3), %s1004_s4, %s589_s5, %s188_s30, %s990_s28, %s867_s8, %s867_s8, %s868_s9  }
  0x5d PF: > { %p590_p8 = scmp.ge.s32.totalorder %s861_s14, 1  ;;  %p195_p9 = scmp.lt.s32.totalorder %s861_s14, 4 }
  0x5f   : > { %p196_p10 = pnand %p590_p8, %p195_p9 }
  0x60   : > { %s201_s17 = sand.u32 (!%p196_p10), 1, %s845_s10  }
  0x61   : > { %199 = sbr.rel (%p196_p10) target bundleno = 212 (0xd4), region = 28  ;;  %s591_s6 = sshll.u32 (!%p196_p10), %s201_s17, 6 }
  0x62   : > { %s202_s7 = scalar_lea.sflag (!%p196_p10), [#allocation3], %s201_s17  ;;  %s205_s19 = scalar_lea.vmem (!%p196_p10), [#allocation2], %s591_s6 }
  0x66   : > { %828 = dma.done.wait (%p931_p7), %s202_s7, 1024  }
  0x67   : > { %830 = vsyncadd (%p931_p7), %s202_s7, 4294966272  ;;  %s212_s24 = scalar_lea.sflag [#allocation6], %s201_s17  ;;  %s1034_s28 = scalar_lea.vmem [#allocation5], %s591_s6 }
  0x68   : > { %832 = dma.done.wait (%p931_p7), %s212_s24, 1024  }
  0x69   : > { %834 = vsyncadd (%p931_p7), %s212_s24, 4294966272  ;;  %p593_p3 = scmp.ne.s32.totalorder %s853_s12, 0 }
  0x6b   : > { %256 = sbr.rel (%p593_p3) target bundleno = 114 (0x72), region = 40 }
  0x70   : > { %v869_v0 = vmov 0.0  }
  0x71   : > { %257 = vst [vmem:[#allocation7] sm:$0xff] %v869_v0 }
  0x72 PF: > { %s594_s18 = sshll.u32 %s853_s12, 6  ;;  %v258_v1 = vld [vmem:[%s205_s19] sm:$0xff]  ;;  %v1046_v2 = vld [vmem:[%s205_s19 + $0x8] sm:$0xff]  ;;  %v1048_v3 = vld [vmem:[%s205_s19 + $0x10] sm:$0xff] }
  0x73   : > { %s1044_s30 = sadd.s32 64, %s594_s18  ;;  %v1050_v4 = vld [vmem:[%s205_s19 + $0x18] sm:$0xff]  ;;  %v1052_v5 = vld [vmem:[%s205_s19 + $0x20] sm:$0xff]  ;;  %v1054_v6 = vld [vmem:[%s205_s19 + $0x28] sm:$0xff]  ;;  %v298_v9 = vand.u32 2147483647, %v258_v1 }
  0x74   : > { %v1056_v7 = vld [vmem:[%s205_s19 + $0x30] sm:$0xff]  ;;  %v1058_v8 = vld [vmem:[%s205_s19 + $0x38] sm:$0xff]  ;;  %v299_v10 = vand.u32 2147483647, %v1046_v2  ;;  %v300_v11 = vand.u32 2147483647, %v1048_v3 }
  0x75   : > { %v301_v12 = vand.u32 2147483647, %v1050_v4  ;;  %v302_v13 = vand.u32 2147483647, %v1052_v5  ;;  %v303_v14 = vand.u32 2147483647, %v1054_v6 }
  0x76   : > { %v304_v15 = vand.u32 2147483647, %v1056_v7  ;;  %v305_v16 = vand.u32 2147483647, %v1058_v8  ;;  %v306_v17 = vsub.f32 0.0, %v298_v9  ;;  %v307_v18 = vsub.f32 0.0, %v299_v10 }
  0x77   : > { %v308_v19 = vsub.f32 0.0, %v300_v11  ;;  %v309_v20 = vsub.f32 0.0, %v301_v12  ;;  %v266_v21 = vld [vmem:[%s1034_s28] sm:$0xff]  ;;  %v274_v22 = vmax.f32 %v258_v1, 0.0  ;;  %v310_v23 = vsub.f32 0.0, %v302_v13  ;;  %v267_v28 = vld [vmem:[%s1034_s28 + $0x8] sm:$0xff] }
  0x78   : > { %v311_v24 = vsub.f32 0.0, %v303_v14  ;;  %v314_v25 = vmul.f32 1.442695, %v306_v17  ;;  %v316_v26 = vmul.f32 1.442695, %v307_v18  ;;  %v268_v29 = vld [vmem:[%s1034_s28 + $0x10] sm:$0xff]  ;;  %v282_v39 = vmul.f32 %v266_v21, %v258_v1 }
  0x79   : > { %v318_v27 = vmul.f32 1.442695, %v308_v19  ;;  %v275_v30 = vmax.f32 %v1046_v2, 0.0  ;;  %v312_v31 = vsub.f32 0.0, %v304_v15  ;;  %v320_v32 = vmul.f32 1.442695, %v309_v20 }
  0x7a   : > { %v276_v33 = vmax.f32 %v1048_v3, 0.0  ;;  %v313_v34 = vsub.f32 0.0, %v305_v16  ;;  %665 = vpow2.f32 %v314_v25  ;;  %v322_v35 = vmul.f32 1.442695, %v310_v23  ;;  %v269_v36 = vld [vmem:[%s1034_s28 + $0x18] sm:$0xff]  ;;  %v270_v40 = vld [vmem:[%s1034_s28 + $0x20] sm:$0xff] }
  0x7b   : > { %v277_v37 = vmax.f32 %v1050_v4, 0.0  ;;  %v278_v38 = vmax.f32 %v1052_v5, 0.0  ;;  %667 = vpow2.f32 %v316_v26  ;;  %v271_v41 = vld [vmem:[%s1034_s28 + $0x28] sm:$0xff]  ;;  %v272_v42 = vld [vmem:[%s1034_s28 + $0x30] sm:$0xff]  ;;  %v283_v43 = vmul.f32 %v267_v28, %v1046_v2  ;;  %v273_v46 = vld [vmem:[%s1034_s28 + $0x38] sm:$0xff]  ;;  %p595_p7 = scmp.le.s32.totalorder %s1044_s30, 160 }
  0x7c   : > { %v284_v44 = vmul.f32 %v268_v29, %v1048_v3  ;;  %669 = vpow2.f32 %v318_v27  ;;  %v324_v45 = vmul.f32 1.442695, %v311_v24  ;;  %v279_v47 = vmax.f32 %v1054_v6, 0.0 }
  0x7d   : > { %v280_v48 = vmax.f32 %v1056_v7, 0.0  ;;  %671 = vpow2.f32 %v320_v32  ;;  %v326_v49 = vmul.f32 1.442695, %v312_v31  ;;  %v281_v50 = vmax.f32 %v1058_v8, 0.0 }
  0x7e   : > { %v285_v51 = vmul.f32 %v269_v36, %v1050_v4  ;;  %673 = vpow2.f32 %v322_v35  ;;  %v328_v52 = vmul.f32 1.442695, %v313_v34  ;;  %v286_v53 = vmul.f32 %v270_v40, %v1052_v5 }
  0x7f   : > { %v287_v54 = vmul.f32 %v271_v41, %v1054_v6  ;;  %v1088_v55 = vmul.f32 %v272_v42, %v1056_v7  ;;  %v1090_v56 = vsub.f32 %v274_v22, %v282_v39  ;;  %v1093_v58 = vmul.f32 %v273_v46, %v1058_v8 }
  0x80   : > { %v666_v57 = vpop.eup %665  ;;  %v1095_v59 = vsub.f32 %v275_v30, %v283_v43  ;;  %v1097_v60 = vsub.f32 %v276_v33, %v284_v44  ;;  %675 = vpow2.f32 %v324_v45  ;;  %v1099_v2 = vsub.f32 %v277_v37, %v285_v51 }
  0x81   : > { %v668_v61 = vpop.eup %667  ;;  %677 = vpow2.f32 %v326_v49  ;;  %v330_v62 = vadd.f32 1.0, %v666_v57  ;;  %v333_v63 = vmul.f32 -0.5, %v666_v57  ;;  %v336_v0 = vand.u32 2147483647, %v666_v57 }
  0x82   : > { %v670_v1 = vpop.eup %669  ;;  %679 = vpow2.f32 %v328_v52  ;;  %v339_v3 = vadd.f32 1.0, %v668_v61  ;;  %v342_v4 = vmul.f32 -0.5, %v668_v61  ;;  %v1101_v6 = vsub.f32 %v278_v38, %v286_v53 }
  0x83   : > { %v672_v5 = vpop.eup %671  ;;  %681 = vlog2.f32 %v330_v62  ;;  %v345_v9 = vand.u32 2147483647, %v668_v61  ;;  %v348_v10 = vadd.f32 1.0, %v670_v1  ;;  %v334_v12 = vadd.f32 1.0, %v333_v63 }
  0x84   : > { %v674_v11 = vpop.eup %673  ;;  %683 = vlog2.f32 %v339_v3  ;;  %v343_v13 = vadd.f32 1.0, %v342_v4  ;;  %v351_v14 = vmul.f32 -0.5, %v670_v1  ;;  %v1103_v15 = vsub.f32 %v279_v47, %v287_v54 }
  0x85   : > { %vm1105_vm0 = vcmp.lt.f32.partialorder %v336_v0, 0.0004427343  ;;  %685 = vlog2.f32 %v348_v10  ;;  %v357_v17 = vadd.f32 1.0, %v672_v5  ;;  %v354_v20 = vand.u32 2147483647, %v670_v1 }
  0x86   : > { %v676_v18 = vpop.eup %675  ;;  %v352_v19 = vadd.f32 1.0, %v351_v14  ;;  %v360_v21 = vmul.f32 -0.5, %v672_v5  ;;  %v363_v22 = vand.u32 2147483647, %v672_v5  ;;  %vm1109_vm1 = vcmp.lt.f32.partialorder %v345_v9, 0.0004427343 }
  0x87   : > { %v678_v23 = vpop.eup %677  ;;  %687 = vlog2.f32 %v357_v17  ;;  %v366_v25 = vadd.f32 1.0, %v674_v11  ;;  %v369_v26 = vmul.f32 -0.5, %v674_v11  ;;  %v335_v28 = vmul.f32 %v666_v57, %v334_v12 }
  0x88   : > { %v680_v27 = vpop.eup %679  ;;  %v344_v29 = vmul.f32 %v668_v61, %v343_v13  ;;  %v361_v30 = vadd.f32 1.0, %v360_v21  ;;  %v372_v31 = vand.u32 2147483647, %v674_v11  ;;  %v375_v34 = vadd.f32 1.0, %v676_v18 }
  0x89   : > { %v682_v32 = vpop.eup %681  ;;  %689 = vlog2.f32 %v366_v25  ;;  %v370_v33 = vadd.f32 1.0, %v369_v26  ;;  %v378_v35 = vmul.f32 -0.5, %v676_v18  ;;  %v353_v38 = vmul.f32 %v670_v1, %v352_v19 }
  0x8a   : > { %v684_v36 = vpop.eup %683  ;;  %v332_v37 = vmul.f32 0.6931472, %v682_v32  ;;  %vm1113_vm2 = vcmp.lt.f32.partialorder %v354_v20, 0.0004427343  ;;  %vm1117_vm3 = vcmp.lt.f32.partialorder %v363_v22, 0.0004427343  ;;  %691 = vlog2.f32 %v375_v34 }
  0x8b   : > { %v686_v41 = vpop.eup %685  ;;  %v341_v42 = vmul.f32 0.6931472, %v684_v36  ;;  %vm1121_vm4 = vcmp.lt.f32.partialorder %v372_v31, 0.0004427343  ;;  %v379_v44 = vadd.f32 1.0, %v378_v35  ;;  %v362_v46 = vmul.f32 %v672_v5, %v361_v30 }
  0x8c   : > { %v350_v45 = vmul.f32 0.6931472, %v686_v41  ;;  %v381_v47 = vand.u32 2147483647, %v676_v18  ;;  %v384_v49 = vadd.f32 1.0, %v678_v23  ;;  %v338_v52 = vsel %vm1105_vm0, %v335_v28, %v332_v37 }
  0x8d   : > { %v688_v51 = vpop.eup %687  ;;  %v347_v53 = vsel %vm1109_vm1, %v344_v29, %v341_v42  ;;  %v371_v54 = vmul.f32 %v674_v11, %v370_v33  ;;  %v387_v57 = vmul.f32 -0.5, %v678_v23  ;;  %v380_v62 = vmul.f32 %v676_v18, %v379_v44 }
  0x8e   : > { %v359_v61 = vmul.f32 0.6931472, %v688_v51  ;;  %693 = vlog2.f32 %v384_v49  ;;  %v393_v63 = vadd.f32 1.0, %v680_v27  ;;  %v356_v1 = vsel %vm1113_vm2, %v353_v38, %v350_v45 }
  0x8f   : > { %v690_v0 = vpop.eup %689  ;;  %v388_v3 = vadd.f32 1.0, %v387_v57  ;;  %v390_v4 = vand.u32 2147483647, %v678_v23  ;;  %v396_v5 = vmul.f32 -0.5, %v680_v27  ;;  %v1134_v12 = vadd.f32 %v338_v52, %v1090_v56 }
  0x90   : > { %v365_v9 = vsel %vm1117_vm3, %v362_v46, %v359_v61  ;;  %v368_v10 = vmul.f32 0.6931472, %v690_v0  ;;  %695 = vlog2.f32 %v393_v63  ;;  %v692_v11 = vpop.eup %691  ;;  %vm1136_vm5 = vcmp.lt.f32.partialorder %v381_v47, 0.0004427343 }
  0x91   : > { %v397_v14 = vadd.f32 1.0, %v396_v5  ;;  %v399_v16 = vand.u32 2147483647, %v680_v27  ;;  %v1141_v17 = vadd.f32 %v347_v53, %v1095_v59  ;;  %v377_v19 = vmul.f32 0.6931472, %v692_v11 }
  0x92   : > { %v374_v18 = vsel %vm1121_vm4, %v371_v54, %v368_v10  ;;  %v1146_v20 = vadd.f32 %v356_v1, %v1097_v60  ;;  %v1149_v56 = vadd.f32 %v365_v9, %v1099_v2  ;;  %v389_v21 = vmul.f32 %v678_v23, %v388_v3 }
  0x93   : > { %v1152_v22 = vadd.f32 %v374_v18, %v1101_v6  ;;  %v296_v59 = vsub.f32 %v280_v48, %v1088_v55  ;;  %v383_v25 = vsel %vm1136_vm5, %v380_v62, %v377_v19  ;;  %vm391_vm6 = vcmp.lt.f32.partialorder %v390_v4, 0.0004427343 }
  0x94   : > { %v694_v24 = vpop.eup %693  ;;  %v398_v28 = vmul.f32 %v680_v27, %v397_v14  ;;  %v407_v60 = vadd.f32 %v383_v25, %v1103_v15  ;;  %v297_v2 = vsub.f32 %v281_v50, %v1093_v58  ;;  %vm400_vm7 = vcmp.lt.f32.partialorder %v399_v16, 0.0004427343 }
  0x95   : > { %v386_v26 = vmul.f32 0.6931472, %v694_v24 }
  0x96   : > { %v696_v29 = vpop.eup %695  ;;  %415 = sbr.rel (%p595_p7) target bundleno = 182 (0xb6), region = 44 }
  0x97   : > { %v392_v6 = vsel %vm391_vm6, %v389_v21, %v386_v26  ;;  %v395_v23 = vmul.f32 0.6931472, %v696_v29 }
  0x98   : > { %v408_v30 = vadd.f32 %v392_v6, %v296_v59 }
  0x99   : > { %v401_v31 = vsel %vm400_vm7, %v398_v28, %v395_v23 }
  0x9a   : > { %v409_v7 = vadd.f32 %v401_v31, %v297_v2 }
  0x9b   : > { %v416_v48 = vlaneseq  ;;  %v425_v27 = vstv %s594_s18  ;;  %v450_v0 = vld [vmem:[#allocation7] sm:$0xff] }
  0x9d   : > { %v417_v55 = vshrl.u32 %v416_v48, 7 }
  0x9f   : > { %v418_v15 = vadd.s32 8, %v417_v55  ;;  %v419_v32 = vadd.s32 16, %v417_v55  ;;  %v420_v33 = vadd.s32 24, %v417_v55  ;;  %v421_v34 = vadd.s32 32, %v417_v55 }
  0xa0   : > { %v422_v8 = vadd.s32 40, %v417_v55  ;;  %v426_v50 = vadd.s32 %v425_v27, %v417_v55  ;;  %v423_v37 = vadd.s32 48, %v417_v55  ;;  %v424_v39 = vadd.s32 56, %v417_v55 }
  0xa1   : > { %v427_v58 = vadd.s32 %v425_v27, %v418_v15  ;;  %v428_v35 = vadd.s32 %v425_v27, %v419_v32  ;;  %v429_v36 = vadd.s32 %v425_v27, %v420_v33  ;;  %v430_v38 = vadd.s32 %v425_v27, %v421_v34 }
  0xa2   : > { %vm434_vm8 = vcmp.lt.s32.totalorder %v426_v50, 160  ;;  %v431_v40 = vadd.s32 %v425_v27, %v422_v8  ;;  %v432_v44 = vadd.s32 %v425_v27, %v423_v37  ;;  %v433_v47 = vadd.s32 %v425_v27, %v424_v39 }
  0xa3   : > { %vm435_vm9 = vcmp.lt.s32.totalorder %v427_v58, 160  ;;  %vm436_vm10 = vcmp.lt.s32.totalorder %v428_v35, 160  ;;  %vm437_vm11 = vcmp.lt.s32.totalorder %v429_v36, 160  ;;  %v442_v41 = vsel %vm434_vm8, %v1134_v12, 0.0 }
  0xa4   : > { %v443_v42 = vsel %vm435_vm9, %v1141_v17, 0.0  ;;  %v444_v43 = vsel %vm436_vm10, %v1146_v20, 0.0  ;;  %vm438_vm12 = vcmp.lt.s32.totalorder %v430_v38, 160  ;;  %v445_v46 = vsel %vm437_vm11, %v1149_v56, 0.0 }
  0xa5   : > { %v451_v45 = vadd.f32 %v443_v42, %v442_v41  ;;  %vm439_vm13 = vcmp.lt.s32.totalorder %v431_v40, 160  ;;  %v446_v51 = vsel %vm438_vm12, %v1152_v22, 0.0  ;;  %vm440_vm14 = vcmp.lt.s32.totalorder %v432_v44, 160 }
  0xa6   : > { %v447_v53 = vsel %vm439_vm13, %v407_v60, 0.0  ;;  %vm441_vm15 = vcmp.lt.s32.totalorder %v433_v47, 160  ;;  %v448_v57 = vsel %vm440_vm14, %v408_v30, 0.0 }
  0xa7   : > { %v452_v49 = vadd.f32 %v451_v45, %v444_v43  ;;  %v449_v62 = vsel %vm441_vm15, %v409_v7, 0.0 }
  0xa9   : > { %v453_v52 = vadd.f32 %v452_v49, %v445_v46 }
  0xab   : > { %v454_v54 = vadd.f32 %v453_v52, %v446_v51 }
  0xad   : > { %v455_v61 = vadd.f32 %v454_v54, %v447_v53 }
  0xaf   : > { %v456_v63 = vadd.f32 %v455_v61, %v448_v57 }
  0xb1   : > { %v457_v1 = vadd.f32 %v456_v63, %v449_v62 }
  0xb3   : > { %v458_v3 = vadd.f32 %v457_v1, %v450_v0 }
  0xb5   : > { %459 = vst [vmem:[#allocation7] sm:$0xff] %v458_v3 }
  0xb6 PF: > { %p596_p11 = scmp.gt.s32.totalorder %s1044_s30, 160 }
  0xb8   : > { %463 = sbr.rel (%p596_p11) target bundleno = 206 (0xce), region = 48 }
  0xbd   : > { %v465_v4 = vadd.f32 %v1141_v17, %v1134_v12  ;;  %v464_v14 = vld [vmem:[#allocation7] sm:$0xff] }
  0xbf   : > { %v466_v5 = vadd.f32 %v465_v4, %v1146_v20 }
  0xc1   : > { %v467_v9 = vadd.f32 %v466_v5, %v1149_v56 }
  0xc3   : > { %v468_v10 = vadd.f32 %v467_v9, %v1152_v22 }
  0xc5   : > { %v469_v11 = vadd.f32 %v468_v10, %v407_v60 }
  0xc7   : > { %v470_v13 = vadd.f32 %v469_v11, %v408_v30 }
  0xc9   : > { %v471_v16 = vadd.f32 %v470_v13, %v409_v7 }
  0xcb   : > { %v472_v18 = vadd.f32 %v471_v16, %v464_v14 }
  0xcd   : > { %473 = vst [vmem:[#allocation7] sm:$0xff] %v472_v18 }
  0xce PF: > { %p609_p12 = scmp.eq.s32.totalorder %s573_s15, 2  ;;  %s484_s4 = sshll.u32 %s1202_s2, 4  ;;  %s485_s4 = int_to_ptr.hbm [resolvable:$true] %s484_s4 }
  0xcf   : > { %s870_s5 = smov [#allocation7]  }
  0xd0   : > { %s482_s22 = sshll.u32 %s870_s5, 4  ;;  %s483_s22 = int_to_ptr.vmem [resolvable:$true] %s482_s22 }
  0xd1   : > { %606 = dma.vmem_to_hbm [thread:$0]  (%p609_p12), %s483_s22, 128, %s485_s4, [#allocation4]  }
  0xd2   : > { %836 = dma.done.wait (%p609_p12), [#allocation4], 128  }
  0xd3   : > { %838 = vsyncadd (%p609_p12), [#allocation4], 4294967168 }
  0xd4 PF: > { %s19_s14 = sadd.s32 1, %s861_s14   ;;  %s1219_s9 = smov %s845_s10 }
  0xd5   : > { %p16_p13 = scmp.ge.s32.totalorder %s19_s14, 5   ;;  %s1220_s10 = smov %s849_s11 }
  0xd6   : > { %s1221_s11 = smov %s936_s21  ;;  %s1222_s12 = smov %s857_s13 }
  0xd7   : > { %s1223_s13 = smov %s1225_s16  ;;  %18 = sbr.rel (!%p16_p13) target bundleno = 7 (0x7), region = 91 }
  0xdc   :  { %498 = vsyncpa [#allocation3], 1 }
  0xdd   :  { %500 = vsyncpa [#allocation3 + $0x1], 1 }
  0xde   :  { %501 = vsyncpa [#allocation6], 1 }
  0xdf   :  { %503 = vsyncpa [#allocation6 + $0x1], 1 }
  0xe0   :  { %504 = vsyncpa [#allocation4], 1 }
  0xe1   :  { %506 = vsyncpa [#allocation4 + $0x1], 1 }

</bundles_post_ra>
